<compile_context>
chip_gen: v5e
topology: v5e:2x2
jax: 0.10.0
libtpu: 0.0.40
codegen_flags: <defaults>
</compile_context>

<pallas_src>
import functools

import jax
import jax.numpy as jnp
from jax.experimental import pallas as pl
from jax.experimental.pallas import tpu as pltpu


def _attn_kernel(scale, return_attn, q_ref, k_ref, v_ref, out_ref, *attn_ref):
    # q_ref: (G, TQ, Dk), k_ref: (G, Dk, Lk), v_ref: (G, Lk, Dv)
    q = q_ref[...].astype(jnp.float32) * scale      # fold scale into q (Dk << Lk)
    k = k_ref[...].astype(jnp.float32)

    # scores = (q * scale) @ k, batched over the fused-head axis g
    scores = jnp.einsum("gqd,gdk->gqk", q, k, preferred_element_type=jnp.float32)

    # numerically stable softmax over the key axis
    m = jnp.max(scores, axis=-1, keepdims=True)
    e = jnp.exp(scores - m)
    s = jnp.sum(e, axis=-1, keepdims=True)
    attn = e * pl.reciprocal(s, approx=True)        # EUP slot; ~free next to exp

    out = jnp.einsum("gqk,gkd->gqd", attn.astype(v_ref.dtype), v_ref[...],
                     preferred_element_type=jnp.float32)
    out_ref[...] = out.astype(out_ref.dtype)
    if return_attn:
        attn_ref[0][...] = attn.astype(attn_ref[0].dtype)


def _largest_divisor_leq(n, cap, multiple_of=1):
    """Largest divisor of n that is <= cap and (multiple of `multiple_of` or == n)."""
    cap = max(1, min(int(cap), n))
    for d in range(cap, 0, -1):
        if n % d == 0 and (d % multiple_of == 0 or d == n):
            return d
    return 1


def _pick_blocks(BH, Lq, Lk, Dk, Dv):
    # q tile: full Lq if small, else a divisor <= 512 that keeps (8,128) tiling legal.
    TQ = Lq if Lq <= 512 else _largest_divisor_leq(Lq, 512, multiple_of=8)
    # heads fused per grid step: largest divisor of BH whose per-step f32 footprint
    # (q,k,v,out,attn + scores intermediate) stays ~<= 6 MiB, so the double-buffered
    # pipeline fits comfortably in VMEM on v5e / v6e / v7x.
    per_head = 4 * (TQ * Dk + Dk * Lk + Lk * Dv + TQ * Dv + 2 * TQ * Lk)
    budget = 6 * 1024 * 1024
    G = _largest_divisor_leq(BH, max(1, budget // max(per_head, 1)))
    return G, TQ


def scaled_dot_product_attention(q, k, v, scale, *, return_attn=True):
    """q: [bs,H,Lq,Dk], k: [bs,H,Dk,Lk], v: [bs,H,Lk,Dv].
    Returns (output [bs,H,Lq,Dv], attn [bs,H,Lq,Lk]) or just output if return_attn=False."""
    bs, H, Lq, Dk = q.shape
    Lk = k.shape[-1]
    Dv = v.shape[-1]
    BH = bs * H

    # glue: merge batch & head dims (no data-dependent compute here)
    q3 = q.reshape(BH, Lq, Dk)
    k3 = k.reshape(BH, Dk, Lk)
    v3 = v.reshape(BH, Lk, Dv)

    G, TQ = _pick_blocks(BH, Lq, Lk, Dk, Dv)
    grid = (BH // G, Lq // TQ)

    in_specs = [
        pl.BlockSpec((G, TQ, Dk), lambda h, qi: (h, qi, 0)),   # q
        pl.BlockSpec((G, Dk, Lk), lambda h, qi: (h, 0, 0)),    # k (reused across q tiles)
        pl.BlockSpec((G, Lk, Dv), lambda h, qi: (h, 0, 0)),    # v (reused across q tiles)
    ]
    out_spec_o = pl.BlockSpec((G, TQ, Dv), lambda h, qi: (h, qi, 0))
    kernel = functools.partial(_attn_kernel, float(scale), return_attn)
    cparams = pltpu.CompilerParams(
        dimension_semantics=("parallel", "parallel"),
        vmem_limit_bytes=48 * 1024 * 1024,
    )

    if return_attn:
        out3, attn3 = pl.pallas_call(
            kernel,
            out_shape=(
                jax.ShapeDtypeStruct((BH, Lq, Dv), q.dtype),
                jax.ShapeDtypeStruct((BH, Lq, Lk), q.dtype),
            ),
            grid=grid,
            in_specs=in_specs,
            out_specs=(
                out_spec_o,
                pl.BlockSpec((G, TQ, Lk), lambda h, qi: (h, qi, 0)),
            ),
            compiler_params=cparams,
        )(q3, k3, v3)
        return out3.reshape(bs, H, Lq, Dv), attn3.reshape(bs, H, Lq, Lk)

    out3 = pl.pallas_call(
        kernel,
        out_shape=jax.ShapeDtypeStruct((BH, Lq, Dv), q.dtype),
        grid=grid,
        in_specs=in_specs,
        out_specs=out_spec_o,
        compiler_params=cparams,
    )(q3, k3, v3)
    return out3.reshape(bs, H, Lq, Dv)


# TODO(synk): prev / attn_mask / key_padding_mask branches of forward are not exercised
#             (all None in the default call path); dropout p=0.0 is identity.
# TODO(synk): for production head_dim/seq shapes, a lane-dense fused-head output layout
#             (bs, Lq, H*Dv) and a flash-style Lk loop (when attn weights are not needed)
#             would further reduce masked stores and VMEM footprint.


if __name__ == "__main__":
    # module config: d_model=32, n_heads=4 -> head_dim=8; lsa=False so scale is the
    # fixed (non-trainable) value head_dim ** -0.5.
    bs, n_heads, d_model = 2, 4, 32
    q_len = seq_len = 8
    head_dim = d_model // n_heads
    scale = head_dim ** -0.5

    key = jax.random.PRNGKey(0)
    kq, kk, kv = jax.random.split(key, 3)
    q = jax.random.normal(kq, (bs, n_heads, q_len, head_dim), jnp.float32)
    k = jax.random.normal(kk, (bs, n_heads, head_dim, seq_len), jnp.float32)
    v = jax.random.normal(kv, (bs, n_heads, seq_len, head_dim), jnp.float32)

    out, attn = scaled_dot_product_attention(q, k, v, scale)
    out = jax.block_until_ready(out)
    attn = jax.block_until_ready(attn)

    # output-only path (skips the attn-weights HBM writeback)
    out_only = jax.block_until_ready(
        scaled_dot_product_attention(q, k, v, scale, return_attn=False))

    # plain-JAX reference; tolerance accounts for the EUP approximate reciprocal
    scores_ref = jnp.einsum("bhqd,bhdk->bhqk", q, k) * scale
    attn_ref = jax.nn.softmax(scores_ref, axis=-1)
    out_ref = jnp.einsum("bhqk,bhkd->bhqd", attn_ref, v)
    assert jnp.allclose(attn, attn_ref, atol=2e-3, rtol=2e-3), "attn mismatch"
    assert jnp.allclose(out, out_ref, atol=2e-3, rtol=2e-3), "output mismatch"
    assert jnp.allclose(out_only, out_ref, atol=2e-3, rtol=2e-3), "output-only mismatch"

    print("KERNEL_OK")
</pallas_src>

<mosaic_0001>
module attributes {stable_mosaic.version = 11 : i64} {
  func.func @_attn_kernel(%arg0: i32, %arg1: i32, %arg2: memref<8x8x8xf32, #tpu.memory_space<vmem>>, %arg3: memref<8x8x8xf32, #tpu.memory_space<vmem>>, %arg4: memref<8x8x8xf32, #tpu.memory_space<vmem>>, %arg5: memref<8x8x8xf32, #tpu.memory_space<vmem>>, %arg6: memref<8x8x8xf32, #tpu.memory_space<vmem>>) attributes {dimension_semantics = [#tpu.dimension_semantics<parallel>, #tpu.dimension_semantics<parallel>], iteration_bounds = array<i64: 1, 1>, scalar_prefetch = 0 : i64, scratch_operands = 0 : i64, tpu.core_type = #tpu.core_type<tc>, window_params = [{transform_indices = @transform_0, window_bounds = array<i64: 8, 8, 8>}, {transform_indices = @transform_1, window_bounds = array<i64: 8, 8, 8>}, {transform_indices = @transform_2, window_bounds = array<i64: 8, 8, 8>}, {transform_indices = @transform_3, window_bounds = array<i64: 8, 8, 8>}, {transform_indices = @transform_4, window_bounds = array<i64: 8, 8, 8>}]} {
    %c0 = arith.constant 0 : index
    %c0_0 = arith.constant 0 : index
    %c0_1 = arith.constant 0 : index
    %0 = vector.load %arg2[%c0, %c0_0, %c0_1] : memref<8x8x8xf32, #tpu.memory_space<vmem>>, vector<8x8x8xf32>
    %cst = arith.constant 0.353553385 : f32
    %1 = vector.broadcast %cst : f32 to vector<8x8x8xf32>
    %2 = arith.mulf %0, %1 : vector<8x8x8xf32>
    %c0_2 = arith.constant 0 : index
    %c0_3 = arith.constant 0 : index
    %c0_4 = arith.constant 0 : index
    %3 = vector.load %arg3[%c0_2, %c0_3, %c0_4] : memref<8x8x8xf32, #tpu.memory_space<vmem>>, vector<8x8x8xf32>
    "tpu.trace_start"() <{level = 10 : i32, message = "gqd,gdk->gqk"}> : () -> ()
    %cst_5 = arith.constant dense<0.000000e+00> : vector<8x8x8xf32>
    %4 = tpu.matmul %2, %3, %cst_5 {dimension_numbers = #tpu.dot_dimension_numbers<[2], [1], [1], [2], [0, 0, 0, 1, 1, 2], [0], [0]>} : vector<8x8x8xf32>, vector<8x8x8xf32>, vector<8x8x8xf32> -> vector<8x8x8xf32>
    "tpu.trace_stop"() : () -> ()
    %cst_6 = arith.constant dense<0xFF800000> : vector<8x8xf32>
    %5 = vector.multi_reduction <maximumf>, %4, %cst_6 [2] : vector<8x8x8xf32> to vector<8x8xf32>
    %6 = vector.shape_cast %5 : vector<8x8xf32> to vector<8x8x1xf32>
    %7 = vector.broadcast %6 : vector<8x8x1xf32> to vector<8x8x8xf32>
    %8 = arith.subf %4, %7 : vector<8x8x8xf32>
    %9 = math.exp %8 : vector<8x8x8xf32>
    %cst_7 = arith.constant dense<0.000000e+00> : vector<8x8xf32>
    %10 = vector.multi_reduction <add>, %9, %cst_7 [2] : vector<8x8x8xf32> to vector<8x8xf32>
    %11 = vector.shape_cast %10 : vector<8x8xf32> to vector<8x8x1xf32>
    %12 = tpu.reciprocal %11 {approx = true} : vector<8x8x1xf32> -> vector<8x8x1xf32>
    %13 = vector.broadcast %12 : vector<8x8x1xf32> to vector<8x8x8xf32>
    %14 = arith.mulf %9, %13 : vector<8x8x8xf32>
    %c0_8 = arith.constant 0 : index
    %c0_9 = arith.constant 0 : index
    %c0_10 = arith.constant 0 : index
    %15 = vector.load %arg4[%c0_8, %c0_9, %c0_10] : memref<8x8x8xf32, #tpu.memory_space<vmem>>, vector<8x8x8xf32>
    "tpu.trace_start"() <{level = 10 : i32, message = "gqk,gkd->gqd"}> : () -> ()
    %cst_11 = arith.constant dense<0.000000e+00> : vector<8x8x8xf32>
    %16 = tpu.matmul %14, %15, %cst_11 {dimension_numbers = #tpu.dot_dimension_numbers<[2], [1], [1], [2], [0, 0, 0, 1, 1, 2], [0], [0]>} : vector<8x8x8xf32>, vector<8x8x8xf32>, vector<8x8x8xf32> -> vector<8x8x8xf32>
    "tpu.trace_stop"() : () -> ()
    %c0_12 = arith.constant 0 : index
    %c0_13 = arith.constant 0 : index
    %c0_14 = arith.constant 0 : index
    %17 = vector.load %arg5[%c0_12, %c0_13, %c0_14] : memref<8x8x8xf32, #tpu.memory_space<vmem>>, vector<8x8x8xf32>
    tpu.vector_store %arg5[%c0_12, %c0_13, %c0_14], %16 {strides = array<i32>} : memref<8x8x8xf32, #tpu.memory_space<vmem>>, vector<8x8x8xf32>,
    %c0_15 = arith.constant 0 : index
    %c0_16 = arith.constant 0 : index
    %c0_17 = arith.constant 0 : index
    %18 = vector.load %arg6[%c0_15, %c0_16, %c0_17] : memref<8x8x8xf32, #tpu.memory_space<vmem>>, vector<8x8x8xf32>
    tpu.vector_store %arg6[%c0_15, %c0_16, %c0_17], %14 {strides = array<i32>} : memref<8x8x8xf32, #tpu.memory_space<vmem>>, vector<8x8x8xf32>,
    return
  }
  func.func @transform_0(%arg0: i32, %arg1: i32) -> (i32, i32, i32) {
    %c0_i32 = arith.constant 0 : i32
    %c0_i32_0 = arith.constant 0 : i32
    return %arg0, %arg1, %c0_i32 : i32, i32, i32
  }
  func.func @transform_1(%arg0: i32, %arg1: i32) -> (i32, i32, i32) {
    %c0_i32 = arith.constant 0 : i32
    %c0_i32_0 = arith.constant 0 : i32
    %c0_i32_1 = arith.constant 0 : i32
    return %arg0, %c0_i32, %c0_i32_0 : i32, i32, i32
  }
  func.func @transform_2(%arg0: i32, %arg1: i32) -> (i32, i32, i32) {
    %c0_i32 = arith.constant 0 : i32
    %c0_i32_0 = arith.constant 0 : i32
    %c0_i32_1 = arith.constant 0 : i32
    return %arg0, %c0_i32, %c0_i32_0 : i32, i32, i32
  }
  func.func @transform_3(%arg0: i32, %arg1: i32) -> (i32, i32, i32) {
    %c0_i32 = arith.constant 0 : i32
    %c0_i32_0 = arith.constant 0 : i32
    return %arg0, %arg1, %c0_i32 : i32, i32, i32
  }
  func.func @transform_4(%arg0: i32, %arg1: i32) -> (i32, i32, i32) {
    %c0_i32 = arith.constant 0 : i32
    %c0_i32_0 = arith.constant 0 : i32
    return %arg0, %arg1, %c0_i32 : i32, i32, i32
  }
}

</mosaic_0001>

<bundles_post_ra>
// kernel: tpu_custom_call.1
= control target key start
LH: loop header
LB: loop body
LE: loop exit
PB: predicated region body
PF: predicated region fallthrough
CT: control target
= control target key end

     0   :  { %10 = vsyncpa [#allocation3], 0  ;;  %s917_s0 = inlined_call_operand.hbm [shape: f32[8,8,8], index: 0, kind: input, shape index: {}]   ;;  %s918_s1 = inlined_call_operand.hbm [shape: f32[8,8,8], index: 1, kind: input, shape index: {}]   ;;  %s919_s2 = inlined_call_operand.hbm [shape: f32[8,8,8], index: 2, kind: input, shape index: {}]   ;;  %s920_s3 = inlined_call_operand.hbm [shape: f32[8,8,8], index: 3, kind: output, shape index: {0}]   ;;  %s921_s4 = inlined_call_operand.hbm [shape: f32[8,8,8], index: 4, kind: output, shape index: {1}]  }
   0x1   :  { %11 = vsyncpa [#allocation6], 0 }
   0x2   :  { %12 = vsyncpa [#allocation4], 0 }
   0x3   :  { %13 = vsyncpa [#allocation10], 0  ;;  %s31_s17 = sshll.u32 %s918_s1, 4  ;;  %s791_s18 = smov [#allocation5]   ;;  %s32_s17 = int_to_ptr.hbm [resolvable:$true] %s31_s17 }
   0x4   :  { %s33_s19 = sshll.u32 %s791_s18, 4  ;;  %s18_s22 = sshll.u32 %s917_s0, 4  ;;  %s34_s19 = int_to_ptr.vmem [resolvable:$true] %s33_s19  ;;  %s19_s22 = int_to_ptr.hbm [resolvable:$true] %s18_s22 }
   0x5   :  { %s792_s23 = smov 128   ;;  %s793_s24 = smov 8  }
   0x6   :  { %39 = dma.hbm_to_vmem [thread:$0]  %s32_s17, 1024, %s34_s19, [#allocation6], %s792_s23, %s792_s23, %s793_s24  }
   0x7   :  { %s794_s25 = smov [#allocation2]   ;;  %s44_s1 = sshll.u32 %s919_s2, 4  ;;  %s45_s1 = int_to_ptr.hbm [resolvable:$true] %s44_s1 }
   0x8   :  { %s20_s26 = sshll.u32 %s794_s25, 4  ;;  %s795_s0 = smov [#allocation7]   ;;  %s21_s26 = int_to_ptr.vmem [resolvable:$true] %s20_s26 }
   0x9   :  { %26 = dma.hbm_to_vmem [thread:$0]  %s19_s22, 1024, %s21_s26, [#allocation3], %s792_s23, %s792_s23, %s793_s24  }
   0xa   :  { %s46_s29 = sshll.u32 %s795_s0, 4  ;;  %s47_s29 = int_to_ptr.vmem [resolvable:$true] %s46_s29 }
   0xb   :  { %52 = dma.hbm_to_vmem [thread:$0]  %s45_s1, 1024, %s47_s29, [#allocation6], %s792_s23, %s792_s23, %s793_s24  }
   0xc   :  { %783 = dma.done.wait [#allocation3], 1024  }
   0xd   :  { %784 = vsyncadd [#allocation3], 4294966272 }
   0xe   :  { %785 = dma.done.wait [#allocation6], 2048  }
   0xf   :  { %786 = vsyncadd [#allocation6], 4294965248  ;;  %v81_v0 = vld [vmem:[#allocation5] sm:$0xff]  ;;  %v83_v1 = vld [vmem:[#allocation5 + $0x10] sm:$0xff]  ;;  %vm89_vm0 = vcmask 64512   ;;  %s796_s2 = smov [#allocation9]  }
  0x10   :  { %v65_v2 = vld [vmem:[#allocation2] sm:$0xff]  ;;  %108 = vmatpush.msra.mxu0 %v81_v0  ;;  %154 = vmatpush.msra.mxu2 %v83_v1  ;;  %v67_v4 = vld [vmem:[#allocation2 + $0x10] sm:$0xff]  ;;  %v82_v6 = vld [vmem:[#allocation5 + $0x8] sm:$0xff]  ;;  %s587_s30 = sshll.u32 %s796_s2, 4  ;;  %s589_s7 = sshll.u32 %s921_s4, 4  ;;  %s588_s30 = int_to_ptr.vmem [resolvable:$true] %s587_s30  ;;  %s590_s7 = int_to_ptr.hbm [resolvable:$true] %s589_s7 }
  0x11   :  { %v73_v3 = vmul.f32 0.35355338, %v65_v2  ;;  %v87_v5 = vld [vmem:[#allocation5 + $0x30] sm:$0xff]  ;;  %v75_v7 = vmul.f32 0.35355338, %v67_v4  ;;  %131 = vmatpush.msra.mxu1 %v82_v6  ;;  %v84_v8 = vld [vmem:[#allocation5 + $0x18] sm:$0xff] }
  0x12   :  { %246 = vmatpush.msrb.mxu2 %v87_v5  ;;  %v66_v9 = vld [vmem:[#allocation2 + $0x8] sm:$0xff]  ;;  %v68_v10 = vld [vmem:[#allocation2 + $0x18] sm:$0xff]  ;;  %177 = vmatpush.msra.mxu3 %v84_v8  ;;  %v71_v15 = vld [vmem:[#allocation2 + $0x30] sm:$0xff]  ;;  %s797_s4 = smov [#allocation8]   ;;  %s576_s11 = sshll.u32 %s920_s3, 4  ;;  %s577_s11 = int_to_ptr.hbm [resolvable:$true] %s576_s11 }
  0x13   :  { %608 = vmatmul.msk.f32.vlgmr.msra.gmra.mxu0 %vm89_vm0, %v73_v3  ;;  %v74_v11 = vmul.f32 0.35355338, %v66_v9  ;;  %v76_v12 = vmul.f32 0.35355338, %v68_v10  ;;  %v88_v13 = vld [vmem:[#allocation5 + $0x38] sm:$0xff]  ;;  %610 = vmatmul.msk.f32.vlgmr.msra.gmra.mxu2 %vm89_vm0, %v75_v7  ;;  %v86_v14 = vld [vmem:[#allocation5 + $0x28] sm:$0xff] }
  0x14   :  { %269 = vmatpush.msrb.mxu3 %v88_v13  ;;  %v85_v16 = vld [vmem:[#allocation5 + $0x20] sm:$0xff]  ;;  %223 = vmatpush.msrb.mxu1 %v86_v14  ;;  %v70_v18 = vld [vmem:[#allocation2 + $0x28] sm:$0xff]  ;;  %v72_v19 = vld [vmem:[#allocation2 + $0x38] sm:$0xff]  ;;  %v79_v21 = vmul.f32 0.35355338, %v71_v15  ;;  %s574_s8 = sshll.u32 %s797_s4, 4  ;;  %s575_s8 = int_to_ptr.vmem [resolvable:$true] %s574_s8 }
  0x15   :  { %609 = vmatmul.msk.f32.vlgmr.msra.gmra.mxu1 %vm89_vm0, %v74_v11  ;;  %611 = vmatmul.msk.f32.vlgmr.msra.gmra.mxu3 %vm89_vm0, %v76_v12  ;;  %v69_v17 = vld [vmem:[#allocation2 + $0x20] sm:$0xff]  ;;  %v78_v22 = vmul.f32 0.35355338, %v70_v18  ;;  %v80_v23 = vmul.f32 0.35355338, %v72_v19  ;;  %v365_v18 = vld [vmem:[#allocation7 + $0x18] sm:$0xff] }
  0x16   :  { %200 = vmatpush.msrb.mxu0 %v85_v16  ;;  %v77_v20 = vmul.f32 0.35355338, %v69_v17  ;;  %v362_v16 = vld [vmem:[#allocation7] sm:$0xff]  ;;  %v364_v17 = vld [vmem:[#allocation7 + $0x10] sm:$0xff]  ;;  %457 = vmatpush.msra.mxu3 %v365_v18  ;;  %v363_v19 = vld [vmem:[#allocation7 + $0x8] sm:$0xff] }
  0x17   :  { %434 = vmatpush.msra.mxu2 %v364_v17  ;;  %411 = vmatpush.msra.mxu1 %v363_v19 }
  0x18   :  { %388 = vmatpush.msra.mxu0 %v362_v16 }
  0x1b   :  { %612 = vmatmul.msk.f32.vlgmr.msrb.gmra.mxu0 %vm89_vm0, %v77_v20  ;;  %614 = vmatmul.msk.f32.vlgmr.msrb.gmra.mxu2 %vm89_vm0, %v79_v21  ;;  %v368_v21 = vld [vmem:[#allocation7 + $0x30] sm:$0xff] }
  0x1c   :  { %526 = vmatpush.msrb.mxu2 %v368_v21 }
  0x1d   :  { %613 = vmatmul.msk.f32.vlgmr.msrb.gmra.mxu1 %vm89_vm0, %v78_v22  ;;  %615 = vmatmul.msk.f32.vlgmr.msrb.gmra.mxu3 %vm89_vm0, %v80_v23  ;;  %v369_v22 = vld [vmem:[#allocation7 + $0x38] sm:$0xff]  ;;  %v366_v23 = vld [vmem:[#allocation7 + $0x20] sm:$0xff] }
  0x1e   :  { %549 = vmatpush.msrb.mxu3 %v369_v22  ;;  %480 = vmatpush.msrb.mxu0 %v366_v23 }
  0x90   :  { %v110_v24 = vpop.f32.mrf.mxu0 }
  0x91   :  { %v274_v25 = vsel %vm89_vm0, %v110_v24, -inf }
  0x92   :  { %275 = vmax.xlane.f32.xlu1 %v274_v25  ;;  %v133_v26 = vpop.f32.mrf.mxu1 }
  0x93   :  { %v277_v28 = vsel %vm89_vm0, %v133_v26, -inf }
  0x96   :  { %v156_v27 = vpop.f32.mrf.mxu2 }
  0x97   :  { %v280_v29 = vsel %vm89_vm0, %v156_v27, -inf }
  0x98   :  { %281 = vmax.xlane.f32.xlu0 %v280_v29  ;;  %v179_v30 = vpop.f32.mrf.mxu3  ;;  %v202_v36 = vpop.f32.mrf.mxu0 }
  0x99   :  { %v283_v32 = vsel %vm89_vm0, %v179_v30, -inf  ;;  %v286_v39 = vsel %vm89_vm0, %v202_v36, -inf }
  0x9a   :  { %278 = vmax.xlane.f32.xlu1 %v277_v28  ;;  %v225_v31 = vpop.f32.mrf.mxu1 }
  0x9b   :  { %v289_v34 = vsel %vm89_vm0, %v225_v31, -inf }
  0x9e   :  { %v248_v33 = vpop.f32.mrf.mxu2 }
  0x9f   :  { %v292_v35 = vsel %vm89_vm0, %v248_v33, -inf }
  0xa0   :  { %284 = vmax.xlane.f32.xlu0 %v283_v32  ;;  %293 = vmax.xlane.f32.xlu2 %v292_v35  ;;  %v271_v37 = vpop.f32.mrf.mxu3 }
  0xa1   :  { %v295_v38 = vsel %vm89_vm0, %v271_v37, -inf }
  0xa2   :  { %290 = vmax.xlane.f32.xlu1 %v289_v34 }
  0xa8   :  { %296 = vmax.xlane.f32.xlu2 %v295_v38  ;;  %287 = vmax.xlane.f32.xlu0 %v286_v39 }
 0x105   :  { %v276_v40 = vpop.xlane.xlu1 %275 }
 0x106   :  { %v298_v41 = vsub.f32 %v110_v24, %v276_v40 }
 0x108   :  { %v306_v42 = vmul.f32 1.442695, %v298_v41 }
 0x10a   :  { %631 = vpow2.f32 %v306_v42 }
 0x10b   :  { %v282_v43 = vpop.xlane.xlu0 %281 }
 0x10c   :  { %v300_v44 = vsub.f32 %v156_v27, %v282_v43  ;;  %v367_v27 = vld [vmem:[#allocation7 + $0x28] sm:$0xff] }
 0x10d   :  { %v279_v45 = vpop.xlane.xlu1 %278  ;;  %503 = vmatpush.msrb.mxu1 %v367_v27 }
 0x10e   :  { %v310_v46 = vmul.f32 1.442695, %v300_v44  ;;  %v299_v47 = vsub.f32 %v133_v26, %v279_v45 }
 0x110   :  { %v857_v48 = vpop.eup %631  ;;  %633 = vpow2.f32 %v310_v46  ;;  %v308_v50 = vmul.f32 1.442695, %v299_v47 }
 0x111   :  { %v322_v49 = vsel %vm89_vm0, %v857_v48, 0.0 }
 0x112   :  { %323 = vadd.xlane.f32.xlu1 %v322_v49  ;;  %635 = vpow2.f32 %v308_v50 }
 0x113   :  { %v285_v51 = vpop.xlane.xlu0 %284  ;;  %v294_v52 = vpop.xlane.xlu2 %293 }
 0x114   :  { %v301_v53 = vsub.f32 %v179_v30, %v285_v51  ;;  %v304_v56 = vsub.f32 %v248_v33, %v294_v52 }
 0x115   :  { %v291_v59 = vpop.xlane.xlu1 %290 }
 0x116   :  { %v861_v54 = vpop.eup %633  ;;  %v312_v55 = vmul.f32 1.442695, %v301_v53  ;;  %v318_v58 = vmul.f32 1.442695, %v304_v56  ;;  %v303_v2 = vsub.f32 %v225_v31, %v291_v59 }
 0x117   :  { %v328_v57 = vsel %vm89_vm0, %v861_v54, 0.0 }
 0x118   :  { %637 = vpow2.f32 %v312_v55  ;;  %329 = vadd.xlane.f32.xlu2 %v328_v57  ;;  %v636_v62 = vpop.eup %635  ;;  %v316_v7 = vmul.f32 1.442695, %v303_v2 }
 0x119   :  { %639 = vpow2.f32 %v318_v58  ;;  %v325_v5 = vsel %vm89_vm0, %v636_v62, 0.0 }
 0x11b   :  { %v297_v60 = vpop.xlane.xlu2 %296  ;;  %v288_v61 = vpop.xlane.xlu0 %287 }
 0x11c   :  { %v305_v63 = vsub.f32 %v271_v37, %v297_v60  ;;  %v302_v0 = vsub.f32 %v202_v36, %v288_v61 }
 0x11e   :  { %v638_v1 = vpop.eup %637  ;;  %v320_v3 = vmul.f32 1.442695, %v305_v63  ;;  %v314_v4 = vmul.f32 1.442695, %v302_v0 }
 0x11f   :  { %v331_v6 = vsel %vm89_vm0, %v638_v1, 0.0  ;;  %v867_v8 = vpop.eup %639 }
 0x120   :  { %641 = vpow2.f32 %v320_v3  ;;  %326 = vadd.xlane.f32.xlu2 %v325_v5  ;;  %332 = vadd.xlane.f32.xlu0 %v331_v6  ;;  %v340_v12 = vsel %vm89_vm0, %v867_v8, 0.0 }
 0x121   :  { %643 = vpow2.f32 %v314_v4 }
 0x122   :  { %645 = vpow2.f32 %v316_v7 }
 0x126   :  { %v642_v9 = vpop.eup %641 }
 0x127   :  { %v644_v10 = vpop.eup %643  ;;  %v343_v11 = vsel %vm89_vm0, %v642_v9, 0.0 }
 0x128   :  { %344 = vadd.xlane.f32.xlu1 %v343_v11  ;;  %341 = vadd.xlane.f32.xlu0 %v340_v12  ;;  %v334_v13 = vsel %vm89_vm0, %v644_v10, 0.0  ;;  %v873_v14 = vpop.eup %645 }
 0x129   :  { %335 = vadd.xlane.f32.xlu2 %v334_v13  ;;  %v337_v15 = vsel %vm89_vm0, %v873_v14, 0.0 }
 0x130   :  { %338 = vadd.xlane.f32.xlu0 %v337_v15 }
 0x185   :  { %v324_v20 = vpop.xlane.xlu1 %323 }
 0x186   :  { %647 = vrcp.f32 %v324_v20 }
 0x18b   :  { %v330_v25 = vpop.xlane.xlu2 %329 }
 0x18c   :  { %v648_v24 = vpop.eup %647  ;;  %649 = vrcp.f32 %v330_v25 }
 0x18d   :  { %v354_v26 = vmul.f32 %v648_v24, %v857_v48 }
 0x18f   :  { %562 = vst.msk [vmem:[#allocation9] sm:$0xff] %vm89_vm0, %v354_v26  ;;  %616 = vmatmul.msk.f32.vlgmr.msra.gmra.mxu0 %vm89_vm0, %v354_v26 }
 0x192   :  { %v650_v28 = vpop.eup %649 }
 0x193   :  { %v356_v29 = vmul.f32 %v650_v28, %v861_v54  ;;  %v327_v30 = vpop.xlane.xlu2 %326  ;;  %v333_v31 = vpop.xlane.xlu0 %332 }
 0x194   :  { %651 = vrcp.f32 %v327_v30 }
 0x195   :  { %564 = vst.msk [vmem:[#allocation9 + $0x10] sm:$0xff] %vm89_vm0, %v356_v29  ;;  %653 = vrcp.f32 %v333_v31  ;;  %618 = vmatmul.msk.f32.vlgmr.msra.gmra.mxu2 %vm89_vm0, %v356_v29 }
 0x19a   :  { %v652_v32 = vpop.eup %651 }
 0x19b   :  { %v654_v33 = vpop.eup %653  ;;  %v355_v34 = vmul.f32 %v652_v32, %v636_v62  ;;  %v345_v35 = vpop.xlane.xlu1 %344 }
 0x19c   :  { %v342_v36 = vpop.xlane.xlu0 %341  ;;  %v357_v37 = vmul.f32 %v654_v33, %v638_v1  ;;  %655 = vrcp.f32 %v345_v35  ;;  %v336_v38 = vpop.xlane.xlu2 %335 }
 0x19d   :  { %563 = vst.msk [vmem:[#allocation9 + $0x8] sm:$0xff] %vm89_vm0, %v355_v34  ;;  %657 = vrcp.f32 %v336_v38  ;;  %617 = vmatmul.msk.f32.vlgmr.msra.gmra.mxu1 %vm89_vm0, %v355_v34 }
 0x19e   :  { %565 = vst.msk [vmem:[#allocation9 + $0x18] sm:$0xff] %vm89_vm0, %v357_v37  ;;  %659 = vrcp.f32 %v342_v36  ;;  %619 = vmatmul.msk.f32.vlgmr.msra.gmra.mxu3 %vm89_vm0, %v357_v37 }
 0x1a2   :  { %v656_v39 = vpop.eup %655 }
 0x1a3   :  { %v658_v40 = vpop.eup %657  ;;  %v361_v41 = vmul.f32 %v656_v39, %v642_v9 }
 0x1a4   :  { %v339_v42 = vpop.xlane.xlu0 %338  ;;  %v660_v43 = vpop.eup %659  ;;  %v358_v44 = vmul.f32 %v658_v40, %v644_v10 }
 0x1a5   :  { %661 = vrcp.f32 %v339_v42  ;;  %569 = vst.msk [vmem:[#allocation9 + $0x38] sm:$0xff] %vm89_vm0, %v361_v41  ;;  %v360_v45 = vmul.f32 %v660_v43, %v867_v8 }
 0x1a6   :  { %566 = vst.msk [vmem:[#allocation9 + $0x20] sm:$0xff] %vm89_vm0, %v358_v44  ;;  %620 = vmatmul.msk.f32.vlgmr.msrb.gmra.mxu0 %vm89_vm0, %v358_v44  ;;  %623 = vmatmul.msk.f32.vlgmr.msrb.gmra.mxu3 %vm89_vm0, %v361_v41 }
 0x1a7   :  { %568 = vst.msk [vmem:[#allocation9 + $0x30] sm:$0xff] %vm89_vm0, %v360_v45  ;;  %622 = vmatmul.msk.f32.vlgmr.msrb.gmra.mxu2 %vm89_vm0, %v360_v45 }
 0x1ab   :  { %v662_v46 = vpop.eup %661 }
 0x1ac   :  { %v359_v47 = vmul.f32 %v662_v46, %v873_v14 }
 0x1ae   :  { %567 = vst.msk [vmem:[#allocation9 + $0x28] sm:$0xff] %vm89_vm0, %v359_v47  ;;  %621 = vmatmul.msk.f32.vlgmr.msrb.gmra.mxu1 %vm89_vm0, %v359_v47 }
 0x1af   :  { %595 = dma.vmem_to_hbm [thread:$0]  %s588_s30, 1024, %s590_s7, [#allocation10], %s792_s23, %s792_s23, %s793_s24  }
 0x20c   :  { %v390_v48 = vpop.f32.mrf.mxu0 }
 0x20d   :  { %554 = vst.msk [vmem:[#allocation8] sm:$0xff] %vm89_vm0, %v390_v48 }
 0x218   :  { %v436_v49 = vpop.f32.mrf.mxu2 }
 0x219   :  { %556 = vst.msk [vmem:[#allocation8 + $0x10] sm:$0xff] %vm89_vm0, %v436_v49 }
 0x21a   :  { %v413_v50 = vpop.f32.mrf.mxu1 }
 0x21b   :  { %555 = vst.msk [vmem:[#allocation8 + $0x8] sm:$0xff] %vm89_vm0, %v413_v50 }
 0x221   :  { %v459_v51 = vpop.f32.mrf.mxu3 }
 0x222   :  { %557 = vst.msk [vmem:[#allocation8 + $0x18] sm:$0xff] %vm89_vm0, %v459_v51 }
 0x223   :  { %v482_v52 = vpop.f32.mrf.mxu0 }
 0x224   :  { %558 = vst.msk [vmem:[#allocation8 + $0x20] sm:$0xff] %vm89_vm0, %v482_v52 }
 0x229   :  { %v551_v53 = vpop.f32.mrf.mxu3 }
 0x22a   :  { %v528_v54 = vpop.f32.mrf.mxu2  ;;  %561 = vst.msk [vmem:[#allocation8 + $0x38] sm:$0xff] %vm89_vm0, %v551_v53 }
 0x22b   :  { %v505_v55 = vpop.f32.mrf.mxu1  ;;  %560 = vst.msk [vmem:[#allocation8 + $0x30] sm:$0xff] %vm89_vm0, %v528_v54 }
 0x22c   :  { %559 = vst.msk [vmem:[#allocation8 + $0x28] sm:$0xff] %vm89_vm0, %v505_v55 }
 0x22d   :  { %582 = dma.vmem_to_hbm [thread:$0]  %s575_s8, 1024, %s577_s11, [#allocation4], %s792_s23, %s792_s23, %s793_s24  }
 0x22e   :  { %787 = dma.done.wait [#allocation4], 1024  }
 0x22f   :  { %788 = vsyncadd [#allocation4], 4294966272 }
 0x230   :  { %789 = dma.done.wait [#allocation10], 1024  }
 0x231   :  { %790 = vsyncadd [#allocation10], 4294966272 }
 0x232   :  { %604 = vsyncpa [#allocation3], 1 }
 0x233   :  { %605 = vsyncpa [#allocation6], 1 }
 0x234   :  { %606 = vsyncpa [#allocation4], 1 }
 0x235   :  { %607 = vsyncpa [#allocation10], 1 }

</bundles_post_ra>
